<compile_context>
chip_gen: v5e
topology: v5e:2x2
jax: 0.10.0
libtpu: 0.0.40
codegen_flags: <defaults>
</compile_context>

<pallas_src>
import math
import functools

import jax
import jax.numpy as jnp
from jax.experimental import pallas as pl
from jax.experimental.pallas import tpu as pltpu


def _sdpa_dropout_kernel(*refs, scale, dropout_p):
    """One group of G (batch*head) slices:
       s = q @ k^T * scale ; softmax(s) ; dropout ; @ k
    """
    if dropout_p > 0.0:
        q_ref, k_ref, bits_ref, o_ref = refs
    else:
        q_ref, k_ref, o_ref = refs
        bits_ref = None

    q = q_ref[...]                     # (G, Sq, D)
    k = k_ref[...]                     # (G, Sk, D)

    # batched scores on the MXU, fp32 accumulate; einsum contracts the last
    # dims directly (no materialized k.T / XLU transpose).
    s = jnp.einsum("gqd,gkd->gqk", q, k,
                   preferred_element_type=jnp.float32) * jnp.float32(scale)

    # numerically-stable softmax along the last axis
    m = jnp.max(s, axis=-1, keepdims=True)
    e = jnp.exp(s - m)
    denom = jnp.sum(e, axis=-1, keepdims=True)
    p = e * pl.reciprocal(denom, approx=True)   # EUP vrcp slot, otherwise idle

    # dropout (training semantics of F.dropout: zero w.p. p, rescale 1/(1-p)),
    # decided entirely in integer space: keep iff bits >= p * 2^32.
    if dropout_p > 0.0:
        bits = bits_ref[...]                    # uint32 (G, Sq, Sk)
        thresh = jnp.uint32(int(dropout_p * 4294967296.0))
        keep = bits >= thresh
        p = jnp.where(keep, p * jnp.float32(1.0 / (1.0 - dropout_p)),
                      jnp.float32(0.0))

    # second matmul against the same input1 tensor (as in the PyTorch module)
    out = jnp.einsum("gqk,gkd->gqd", p.astype(k.dtype), k,
                     preferred_element_type=jnp.float32)
    o_ref[...] = out.astype(o_ref.dtype)


def _pick_group(bh, sq, sk, d, itemsize=4, budget=8 * 1024 * 1024):
    """Largest divisor of BH whose per-step working set (double-buffered
    q/k/out/bits + f32 score temporaries) stays well inside the scoped VMEM
    budget (conservative for v7x's smaller 64 MiB VMEM)."""
    per = 2 * itemsize * (sq * d + sk * d + sq * d + sq * sk)  # DMA-buffered tiles x2
    per += 4 * itemsize * sq * sk                              # score/exp/mask temps
    best = 1
    for g in range(1, bh + 1):
        if bh % g == 0 and g * per <= budget:
            best = g
    return best


def sdpa_dropout(q, k, *, dropout_p=0.1, key=None):
    """q: [B, H, Sq, D], k: [B, H, Sk, D] -> [B, H, Sq, D]"""
    B, H, Sq, D = q.shape
    _, _, Sk, Dk = k.shape
    assert Dk == D
    BH = B * H

    if dropout_p >= 1.0:
        # F.dropout with p == 1 zeroes everything -> output is all zeros.
        return jnp.zeros((B, H, Sq, D), q.dtype)

    qf = q.reshape(BH, Sq, D)
    kf = k.reshape(BH, Sk, D)
    scale = 1.0 / math.sqrt(D)

    G = _pick_group(BH, Sq, Sk, D, itemsize=q.dtype.itemsize)
    grid = (BH // G,)

    inputs = [qf, kf]
    in_specs = [
        pl.BlockSpec((G, Sq, D), lambda i: (i, 0, 0)),
        pl.BlockSpec((G, Sk, D), lambda i: (i, 0, 0)),
    ]

    use_dropout = dropout_p > 0.0
    if use_dropout:
        if key is None:
            key = jax.random.PRNGKey(0)
        bits = jax.random.bits(key, (BH, Sq, Sk), dtype=jnp.uint32)
        inputs.append(bits)
        in_specs.append(pl.BlockSpec((G, Sq, Sk), lambda i: (i, 0, 0)))

    kernel = functools.partial(_sdpa_dropout_kernel,
                               scale=scale, dropout_p=float(dropout_p))

    itemsize = q.dtype.itemsize
    cost = pl.CostEstimate(
        flops=4 * BH * Sq * Sk * D,
        transcendentals=BH * Sq * Sk,
        bytes_accessed=(qf.size + kf.size + BH * Sq * D) * itemsize
        + (BH * Sq * Sk * 4 if use_dropout else 0),
    )

    out = pl.pallas_call(
        kernel,
        out_shape=jax.ShapeDtypeStruct((BH, Sq, D), q.dtype),
        grid=grid,
        in_specs=in_specs,
        out_specs=pl.BlockSpec((G, Sq, D), lambda i: (i, 0, 0)),
        compiler_params=pltpu.CompilerParams(
            # no cross-iteration state (randomness is a plain input), so the
            # grid axis can be sharded across both v7x TensorCores.
            dimension_semantics=("parallel",)),
        cost_estimate=cost,
    )(*inputs)

    return out.reshape(B, H, Sq, D)


if __name__ == "__main__":
    key = jax.random.PRNGKey(0)
    k0, k1, k2 = jax.random.split(key, 3)
    B, H, Sq, Sk, D = 2, 2, 8, 8, 32
    x0 = jax.random.normal(k0, (B, H, Sq, D), dtype=jnp.float32)
    x1 = jax.random.normal(k1, (B, H, Sk, D), dtype=jnp.float32)

    out = sdpa_dropout(x0, x1, dropout_p=0.1, key=k2)
    jax.block_until_ready(out)
    assert out.shape == (B, H, Sq, D)
    assert bool(jnp.all(jnp.isfinite(out)))
    print("KERNEL_OK")
</pallas_src>

<mosaic_0001>
module attributes {stable_mosaic.version = 11 : i64} {
  func.func @_sdpa_dropout_kernel(%arg0: i32, %arg1: memref<4x8x32xf32, #tpu.memory_space<vmem>>, %arg2: memref<4x8x32xf32, #tpu.memory_space<vmem>>, %arg3: memref<4x8x8xi32, #tpu.memory_space<vmem>>, %arg4: memref<4x8x32xf32, #tpu.memory_space<vmem>>) attributes {dimension_semantics = [#tpu.dimension_semantics<parallel>], iteration_bounds = array<i64: 1>, scalar_prefetch = 0 : i64, scratch_operands = 0 : i64, tpu.core_type = #tpu.core_type<tc>, window_params = [{transform_indices = @transform_0, window_bounds = array<i64: 4, 8, 32>}, {transform_indices = @transform_1, window_bounds = array<i64: 4, 8, 32>}, {transform_indices = @transform_2, window_bounds = array<i64: 4, 8, 8>}, {transform_indices = @transform_3, window_bounds = array<i64: 4, 8, 32>}]} {
    %c0 = arith.constant 0 : index
    %c0_0 = arith.constant 0 : index
    %c0_1 = arith.constant 0 : index
    %0 = vector.load %arg1[%c0, %c0_0, %c0_1] : memref<4x8x32xf32, #tpu.memory_space<vmem>>, vector<4x8x32xf32>
    %c0_2 = arith.constant 0 : index
    %c0_3 = arith.constant 0 : index
    %c0_4 = arith.constant 0 : index
    %1 = vector.load %arg2[%c0_2, %c0_3, %c0_4] : memref<4x8x32xf32, #tpu.memory_space<vmem>>, vector<4x8x32xf32>
    "tpu.trace_start"() <{level = 10 : i32, message = "gqd,gkd->gqk"}> : () -> ()
    %cst = arith.constant dense<0.000000e+00> : vector<4x8x8xf32>
    %2 = tpu.matmul %0, %1, %cst {dimension_numbers = #tpu.dot_dimension_numbers<[2], [2], [1], [1], [0, 0, 0, 1, 1, 1], [0], [0]>} : vector<4x8x32xf32>, vector<4x8x32xf32>, vector<4x8x8xf32> -> vector<4x8x8xf32>
    "tpu.trace_stop"() : () -> ()
    %cst_5 = arith.constant 0.176776692 : f32
    %3 = vector.broadcast %cst_5 : f32 to vector<4x8x8xf32>
    %4 = arith.mulf %2, %3 : vector<4x8x8xf32>
    %cst_6 = arith.constant dense<0xFF800000> : vector<4x8xf32>
    %5 = vector.multi_reduction <maximumf>, %4, %cst_6 [2] : vector<4x8x8xf32> to vector<4x8xf32>
    %6 = vector.shape_cast %5 : vector<4x8xf32> to vector<4x8x1xf32>
    %7 = vector.broadcast %6 : vector<4x8x1xf32> to vector<4x8x8xf32>
    %8 = arith.subf %4, %7 : vector<4x8x8xf32>
    %9 = math.exp %8 : vector<4x8x8xf32>
    %cst_7 = arith.constant dense<0.000000e+00> : vector<4x8xf32>
    %10 = vector.multi_reduction <add>, %9, %cst_7 [2] : vector<4x8x8xf32> to vector<4x8xf32>
    %11 = vector.shape_cast %10 : vector<4x8xf32> to vector<4x8x1xf32>
    %12 = tpu.reciprocal %11 {approx = true} : vector<4x8x1xf32> -> vector<4x8x1xf32>
    %13 = vector.broadcast %12 : vector<4x8x1xf32> to vector<4x8x8xf32>
    %14 = arith.mulf %9, %13 : vector<4x8x8xf32>
    %c0_8 = arith.constant 0 : index
    %c0_9 = arith.constant 0 : index
    %c0_10 = arith.constant 0 : index
    %15 = vector.load %arg3[%c0_8, %c0_9, %c0_10] : memref<4x8x8xi32, #tpu.memory_space<vmem>>, vector<4x8x8xi32>
    %c429496729_i32 = arith.constant 429496729 : i32
    %16 = vector.broadcast %c429496729_i32 : i32 to vector<4x8x8xi32>
    %17 = arith.cmpi uge, %15, %16 : vector<4x8x8xi32>
    %cst_11 = arith.constant 1.11111116 : f32
    %18 = vector.broadcast %cst_11 : f32 to vector<4x8x8xf32>
    %19 = arith.mulf %14, %18 : vector<4x8x8xf32>
    %cst_12 = arith.constant 0.000000e+00 : f32
    %20 = vector.broadcast %cst_12 : f32 to vector<4x8x8xf32>
    %21 = arith.select %17, %19, %20 : vector<4x8x8xi1>, vector<4x8x8xf32>
    "tpu.trace_start"() <{level = 10 : i32, message = "gqk,gkd->gqd"}> : () -> ()
    %cst_13 = arith.constant dense<0.000000e+00> : vector<4x8x32xf32>
    %22 = tpu.matmul %21, %1, %cst_13 {dimension_numbers = #tpu.dot_dimension_numbers<[2], [1], [1], [2], [0, 0, 0, 1, 1, 2], [0], [0]>} : vector<4x8x8xf32>, vector<4x8x32xf32>, vector<4x8x32xf32> -> vector<4x8x32xf32>
    "tpu.trace_stop"() : () -> ()
    %c0_14 = arith.constant 0 : index
    %c0_15 = arith.constant 0 : index
    %c0_16 = arith.constant 0 : index
    %23 = vector.load %arg4[%c0_14, %c0_15, %c0_16] : memref<4x8x32xf32, #tpu.memory_space<vmem>>, vector<4x8x32xf32>
    tpu.vector_store %arg4[%c0_14, %c0_15, %c0_16], %22 {strides = array<i32>} : memref<4x8x32xf32, #tpu.memory_space<vmem>>, vector<4x8x32xf32>,
    return
  }
  func.func @transform_0(%arg0: i32) -> (i32, i32, i32) {
    %c0_i32 = arith.constant 0 : i32
    %c0_i32_0 = arith.constant 0 : i32
    %c0_i32_1 = arith.constant 0 : i32
    return %arg0, %c0_i32, %c0_i32_0 : i32, i32, i32
  }
  func.func @transform_1(%arg0: i32) -> (i32, i32, i32) {
    %c0_i32 = arith.constant 0 : i32
    %c0_i32_0 = arith.constant 0 : i32
    %c0_i32_1 = arith.constant 0 : i32
    return %arg0, %c0_i32, %c0_i32_0 : i32, i32, i32
  }
  func.func @transform_2(%arg0: i32) -> (i32, i32, i32) {
    %c0_i32 = arith.constant 0 : i32
    %c0_i32_0 = arith.constant 0 : i32
    %c0_i32_1 = arith.constant 0 : i32
    return %arg0, %c0_i32, %c0_i32_0 : i32, i32, i32
  }
  func.func @transform_3(%arg0: i32) -> (i32, i32, i32) {
    %c0_i32 = arith.constant 0 : i32
    %c0_i32_0 = arith.constant 0 : i32
    %c0_i32_1 = arith.constant 0 : i32
    return %arg0, %c0_i32, %c0_i32_0 : i32, i32, i32
  }
}

</mosaic_0001>

<bundles_post_ra>
// kernel: tpu_custom_call.1
= control target key start
LH: loop header
LB: loop body
LE: loop exit
PB: predicated region body
PF: predicated region fallthrough
CT: control target
= control target key end

     0   :  { %8 = vsyncpa [#allocation3], 0  ;;  %s578_s0 = inlined_call_operand.hbm [shape: f32[4,8,32], index: 0, kind: input, shape index: {}]   ;;  %s579_s1 = inlined_call_operand.hbm [shape: f32[4,8,32], index: 1, kind: input, shape index: {}]   ;;  %s580_s2 = inlined_call_operand.hbm [shape: u32[4,8,8], index: 2, kind: input, shape index: {}]   ;;  %s581_s3 = inlined_call_operand.hbm [shape: f32[4,8,32], index: 3, kind: output, shape index: {}]  }
   0x1   :  { %9 = vsyncpa [#allocation6], 0 }
   0x2   :  { %10 = vsyncpa [#allocation4], 0  ;;  %s28_s14 = sshll.u32 %s579_s1, 4  ;;  %s504_s15 = smov [#allocation5]   ;;  %s29_s14 = int_to_ptr.hbm [resolvable:$true] %s28_s14 }
   0x3   :  { %s30_s16 = sshll.u32 %s504_s15, 4  ;;  %s15_s19 = sshll.u32 %s578_s0, 4  ;;  %s31_s16 = int_to_ptr.vmem [resolvable:$true] %s30_s16  ;;  %s16_s19 = int_to_ptr.hbm [resolvable:$true] %s15_s19 }
   0x4   :  { %s505_s20 = smov 128   ;;  %s506_s21 = smov 8  }
   0x5   :  { %36 = dma.hbm_to_vmem [thread:$0]  %s29_s14, 512, %s31_s16, [#allocation6], %s505_s20, %s505_s20, %s506_s21  }
   0x6   :  { %s507_s22 = smov [#allocation2]   ;;  %s41_s1 = sshll.u32 %s580_s2, 4  ;;  %s42_s1 = int_to_ptr.hbm [resolvable:$true] %s41_s1 }
   0x7   :  { %s17_s23 = sshll.u32 %s507_s22, 4  ;;  %s508_s0 = smov [#allocation7]   ;;  %s18_s23 = int_to_ptr.vmem [resolvable:$true] %s17_s23 }
   0x8   :  { %23 = dma.hbm_to_vmem [thread:$0]  %s16_s19, 512, %s18_s23, [#allocation3], %s505_s20, %s505_s20, %s506_s21  }
   0x9   :  { %s43_s26 = sshll.u32 %s508_s0, 4  ;;  %s44_s26 = int_to_ptr.vmem [resolvable:$true] %s43_s26 }
   0xa   :  { %49 = dma.hbm_to_vmem [thread:$0]  %s42_s1, 512, %s44_s26, [#allocation6], %s505_s20, %s505_s20, %s506_s21  }
   0xb   :  { %498 = dma.done.wait [#allocation3], 512  }
   0xc   :  { %499 = vsyncadd [#allocation3], 4294966784 }
   0xd   :  { %500 = dma.done.wait [#allocation6], 1024  }
   0xe   :  { %501 = vsyncadd [#allocation6], 4294966272  ;;  %vm70_vm0 = vcmask 261120   ;;  %v66_v0 = vld [vmem:[#allocation5] sm:$0xff]  ;;  %v68_v1 = vld [vmem:[#allocation5 + $0x10] sm:$0xff]  ;;  %vm179_vm1 = vcmask 64512  }
   0xf   :  { %v62_v2 = vld [vmem:[#allocation2] sm:$0xff]  ;;  %364 = vmatpush.xpose.msk.msra.mxu0 %vm70_vm0, %v66_v0  ;;  %368 = vmatpush.xpose.msk.msra.mxu2 %vm70_vm0, %v68_v1  ;;  %v64_v3 = vld [vmem:[#allocation2 + $0x10] sm:$0xff]  ;;  %v67_v4 = vld [vmem:[#allocation5 + $0x8] sm:$0xff]  ;;  %s509_s2 = smov [#allocation8]   ;;  %s350_s30 = sshll.u32 %s581_s3, 4  ;;  %s351_s30 = int_to_ptr.hbm [resolvable:$true] %s350_s30 }
  0x10   :  { %v69_v5 = vld [vmem:[#allocation5 + $0x18] sm:$0xff]  ;;  %366 = vmatpush.xpose.msk.msra.mxu1 %vm70_vm0, %v67_v4  ;;  %v63_v6 = vld [vmem:[#allocation2 + $0x8] sm:$0xff]  ;;  %v224_v41 = vld [vmem:[#allocation7] sm:$0xff]  ;;  %s348_s27 = sshll.u32 %s509_s2, 4  ;;  %s349_s27 = int_to_ptr.vmem [resolvable:$true] %s348_s27 }
  0x11   :  { %370 = vmatpush.xpose.msk.msra.mxu3 %vm70_vm0, %v69_v5  ;;  %v65_v7 = vld [vmem:[#allocation2 + $0x18] sm:$0xff]  ;;  %v372_v42 = vxor.u32 2147483648, %v224_v41  ;;  %v226_v47 = vld [vmem:[#allocation7 + $0x10] sm:$0xff]  ;;  %v225_v49 = vld [vmem:[#allocation7 + $0x8] sm:$0xff] }
  0x12   :  { %365 = vmatmul.msk.f32.vlgmr.msra.gmra.mxu0 %vm70_vm0, %v62_v2  ;;  %369 = vmatmul.msk.f32.vlgmr.msra.gmra.mxu2 %vm70_vm0, %v64_v3  ;;  %v374_v50 = vxor.u32 2147483648, %v226_v47  ;;  %v373_v53 = vxor.u32 2147483648, %v225_v49  ;;  %v227_v59 = vld [vmem:[#allocation7 + $0x18] sm:$0xff] }
  0x13   :  { %266 = vmatpush.msrb.mxu0 %v66_v0  ;;  %312 = vmatpush.msrb.mxu2 %v68_v1  ;;  %vm230_vm2 = vcmp.ge.s32.totalorder %v372_v42, 2576980377  ;;  %v375_v62 = vxor.u32 2147483648, %v227_v59 }
  0x14   :  { %367 = vmatmul.msk.f32.vlgmr.msra.gmra.mxu1 %vm70_vm0, %v63_v6  ;;  %371 = vmatmul.msk.f32.vlgmr.msra.gmra.mxu3 %vm70_vm0, %v65_v7  ;;  %vm236_vm3 = vcmp.ge.s32.totalorder %v374_v50, 2576980377  ;;  %vm233_vm4 = vcmp.ge.s32.totalorder %v373_v53, 2576980377 }
  0x15   :  { %335 = vmatpush.msrb.mxu3 %v69_v5  ;;  %289 = vmatpush.msrb.mxu1 %v67_v4  ;;  %vm239_vm5 = vcmp.ge.s32.totalorder %v375_v62, 2576980377 }
  0x8f   :  { %v94_v8 = vpop.f32.mrf.mxu0 }
  0x90   :  { %v175_v9 = vmul.f32 0.17677669, %v94_v8 }
  0x91   :  { %v120_v10 = vpop.f32.mrf.mxu1 }
  0x92   :  { %v180_v11 = vsel %vm179_vm1, %v175_v9, -inf  ;;  %v176_v12 = vmul.f32 0.17677669, %v120_v10 }
  0x93   :  { %181 = vmax.xlane.f32.xlu1 %v180_v11 }
  0x94   :  { %v183_v17 = vsel %vm179_vm1, %v176_v12, -inf }
  0x95   :  { %v146_v13 = vpop.f32.mrf.mxu2 }
  0x96   :  { %v177_v14 = vmul.f32 0.17677669, %v146_v13 }
  0x97   :  { %v172_v15 = vpop.f32.mrf.mxu3 }
  0x98   :  { %v186_v16 = vsel %vm179_vm1, %v177_v14, -inf  ;;  %v178_v18 = vmul.f32 0.17677669, %v172_v15 }
  0x99   :  { %187 = vmax.xlane.f32.xlu0 %v186_v16 }
  0x9a   :  { %v189_v19 = vsel %vm179_vm1, %v178_v18, -inf }
  0x9b   :  { %184 = vmax.xlane.f32.xlu1 %v183_v17 }
  0xa1   :  { %190 = vmax.xlane.f32.xlu0 %v189_v19 }
 0x106   :  { %v182_v20 = vpop.xlane.xlu1 %181 }
 0x107   :  { %v192_v21 = vsub.f32 %v175_v9, %v182_v20 }
 0x109   :  { %v196_v22 = vmul.f32 1.442695, %v192_v21 }
 0x10b   :  { %386 = vpow2.f32 %v196_v22 }
 0x10c   :  { %v188_v23 = vpop.xlane.xlu0 %187 }
 0x10d   :  { %v194_v24 = vsub.f32 %v177_v14, %v188_v23 }
 0x10e   :  { %v185_v25 = vpop.xlane.xlu1 %184 }
 0x10f   :  { %v200_v26 = vmul.f32 1.442695, %v194_v24  ;;  %v193_v27 = vsub.f32 %v176_v12, %v185_v25 }
 0x111   :  { %v387_v28 = vpop.eup %386  ;;  %388 = vpow2.f32 %v200_v26  ;;  %v198_v29 = vmul.f32 1.442695, %v193_v27 }
 0x112   :  { %v204_v30 = vsel %vm179_vm1, %v387_v28, 0.0 }
 0x113   :  { %390 = vpow2.f32 %v198_v29  ;;  %205 = vadd.xlane.f32.xlu0 %v204_v30 }
 0x114   :  { %v191_v31 = vpop.xlane.xlu0 %190 }
 0x115   :  { %v195_v32 = vsub.f32 %v178_v18, %v191_v31 }
 0x117   :  { %v389_v33 = vpop.eup %388  ;;  %v202_v34 = vmul.f32 1.442695, %v195_v32 }
 0x118   :  { %v210_v35 = vsel %vm179_vm1, %v389_v33, 0.0 }
 0x119   :  { %v391_v36 = vpop.eup %390  ;;  %392 = vpow2.f32 %v202_v34  ;;  %211 = vadd.xlane.f32.xlu2 %v210_v35 }
 0x11a   :  { %v207_v37 = vsel %vm179_vm1, %v391_v36, 0.0 }
 0x11b   :  { %208 = vadd.xlane.f32.xlu1 %v207_v37 }
 0x11f   :  { %v393_v38 = vpop.eup %392 }
 0x120   :  { %v213_v39 = vsel %vm179_vm1, %v393_v38, 0.0 }
 0x121   :  { %214 = vadd.xlane.f32.xlu2 %v213_v39 }
 0x186   :  { %v206_v40 = vpop.xlane.xlu0 %205 }
 0x187   :  { %394 = vrcp.f32 %v206_v40 }
 0x18c   :  { %v212_v43 = vpop.xlane.xlu2 %211 }
 0x18d   :  { %v395_v44 = vpop.eup %394  ;;  %396 = vrcp.f32 %v212_v43 }
 0x18e   :  { %v209_v45 = vpop.xlane.xlu1 %208  ;;  %v220_v46 = vmul.f32 %v395_v44, %v387_v28 }
 0x18f   :  { %398 = vrcp.f32 %v209_v45 }
 0x190   :  { %v240_v48 = vmul.f32 1.1111112, %v220_v46 }
 0x192   :  { %v244_v51 = vsel %vm230_vm2, %v240_v48, 0.0 }
 0x193   :  { %v397_v52 = vpop.eup %396  ;;  %376 = vmatmul.msk.f32.vlgmr.msrb.gmra.mxu0 %vm179_vm1, %v244_v51 }
 0x194   :  { %v215_v54 = vpop.xlane.xlu2 %214  ;;  %v222_v55 = vmul.f32 %v397_v52, %v389_v33 }
 0x195   :  { %v399_v56 = vpop.eup %398  ;;  %400 = vrcp.f32 %v215_v54 }
 0x196   :  { %v242_v57 = vmul.f32 1.1111112, %v222_v55  ;;  %v221_v58 = vmul.f32 %v399_v56, %v391_v36 }
 0x198   :  { %v246_v60 = vsel %vm236_vm3, %v242_v57, 0.0  ;;  %v241_v61 = vmul.f32 1.1111112, %v221_v58 }
 0x199   :  { %378 = vmatmul.msk.f32.vlgmr.msrb.gmra.mxu2 %vm179_vm1, %v246_v60 }
 0x19a   :  { %v245_v63 = vsel %vm233_vm4, %v241_v61, 0.0 }
 0x19b   :  { %v401_v0 = vpop.eup %400  ;;  %377 = vmatmul.msk.f32.vlgmr.msrb.gmra.mxu1 %vm179_vm1, %v245_v63 }
 0x19c   :  { %v223_v1 = vmul.f32 %v401_v0, %v393_v38 }
 0x19e   :  { %v243_v2 = vmul.f32 1.1111112, %v223_v1 }
 0x1a0   :  { %v247_v3 = vsel %vm239_vm5, %v243_v2, 0.0 }
 0x1a1   :  { %379 = vmatmul.msk.f32.vlgmr.msrb.gmra.mxu3 %vm179_vm1, %v247_v3 }
 0x210   :  { %v268_v4 = vpop.f32.mrf.mxu0 }
 0x211   :  { %340 = vst.msk [vmem:[#allocation8] sm:$0xff] %vm70_vm0, %v268_v4 }
 0x218   :  { %v291_v5 = vpop.f32.mrf.mxu1 }
 0x219   :  { %341 = vst.msk [vmem:[#allocation8 + $0x8] sm:$0xff] %vm70_vm0, %v291_v5 }
 0x21c   :  { %v314_v6 = vpop.f32.mrf.mxu2 }
 0x21d   :  { %342 = vst.msk [vmem:[#allocation8 + $0x10] sm:$0xff] %vm70_vm0, %v314_v6 }
 0x224   :  { %v337_v7 = vpop.f32.mrf.mxu3 }
 0x225   :  { %343 = vst.msk [vmem:[#allocation8 + $0x18] sm:$0xff] %vm70_vm0, %v337_v7 }
 0x226   :  { %356 = dma.vmem_to_hbm [thread:$0]  %s349_s27, 512, %s351_s30, [#allocation4], %s505_s20, %s505_s20, %s506_s21  }
 0x227   :  { %502 = dma.done.wait [#allocation4], 512  }
 0x228   :  { %503 = vsyncadd [#allocation4], 4294966784 }
 0x229   :  { %361 = vsyncpa [#allocation3], 1 }
 0x22a   :  { %362 = vsyncpa [#allocation6], 1 }
 0x22b   :  { %363 = vsyncpa [#allocation4], 1 }

</bundles_post_ra>
